<compile_context>
chip_gen: v7x
topology: tpu7x:2x2x1
jax: 0.10.0
libtpu: 0.0.40
codegen_flags: <defaults>
</compile_context>

<pallas_src>
import math

import jax
import jax.numpy as jnp
from jax.experimental import pallas as pl
from jax.experimental.pallas import tpu as pltpu


def toy_model_kernel(m_ref, b_ref, x_ref, o_ref):
    # m_ref: (IF, IF) block-diagonal W_i^T @ W_i  -- resident across batch tiles
    # b_ref: (1, IF)  flattened bias (f32)        -- resident across batch tiles
    # x_ref: (tile_b, IF) flattened features
    # o_ref: (tile_b, IF)
    out = jnp.dot(x_ref[...], m_ref[...], preferred_element_type=jnp.float32)
    o_ref[...] = jnp.maximum(out + b_ref[...], 0.0).astype(o_ref.dtype)


def toy_model_forward(features, W, b_final, *, max_tile_b=4096):
    """features: (..., n_inst, n_features); W: (n_inst, d_hidden, n_features);
    b_final: (n_inst, n_features).  Returns relu(x @ W^T @ W + b) with the same
    shape/layout as the input."""
    *lead, n_inst, n_feats = features.shape
    w_inst, d_hidden, w_feats = W.shape
    assert w_inst == n_inst and w_feats == n_feats
    assert b_final.shape == (n_inst, n_feats)

    batch = math.prod(lead) if lead else 1
    IF = n_inst * n_feats

    # ---- wrapper-side weight prep (tiny: 8x5x5) --------------------------
    # Per-instance Gram matrix M_i = W_i^T @ W_i, assembled block-diagonally
    # so one (tile_b, IF) x (IF, IF) MXU dot does all instances at once.
    M = jnp.einsum("ihf,ihg->ifg", W.astype(jnp.float32), W.astype(jnp.float32))
    eye = jnp.eye(n_inst, dtype=jnp.float32)
    M_bd = jnp.einsum("ifg,ij->ifjg", M, eye).reshape(IF, IF)
    if features.dtype in (jnp.bfloat16, jnp.float32):
        # keep MXU operands in the input dtype (bf16 operands halve vld traffic)
        M_bd = M_bd.astype(features.dtype)
    b_flat = b_final.reshape(1, IF).astype(jnp.float32)

    # Flatten the trailing dims (contiguous reshape -> free).
    x_flat = features.reshape(batch, IF)

    # ---- batch tiling -----------------------------------------------------
    tile_b = min(max_tile_b, batch)
    if tile_b < batch:
        tile_b = max(8, (tile_b // 8) * 8)   # (8,128) rule on partial-extent dims
    # Prefer >=2 batch tiles so v7x's two TensorCores both get work
    # (no-op concern on single-TC v5e/v6e; skipped for tiny batches).
    if batch >= 16 and pl.cdiv(batch, tile_b) < 2:
        tile_b = max(8, ((pl.cdiv(batch, 2) + 7) // 8) * 8)
    grid = (pl.cdiv(batch, tile_b),)

    out_flat = pl.pallas_call(
        toy_model_kernel,
        out_shape=jax.ShapeDtypeStruct((batch, IF), features.dtype),
        grid_spec=pltpu.PrefetchScalarGridSpec(
            num_scalar_prefetch=0,
            grid=grid,
            in_specs=[
                # M / b: constant index_map -> stay resident in VMEM.
                pl.BlockSpec((IF, IF), lambda i: (0, 0)),
                pl.BlockSpec((1, IF), lambda i: (0, 0)),
                # x: tiled over batch only; last dim equals the full array dim.
                pl.BlockSpec((tile_b, IF), lambda i: (i, 0)),
            ],
            out_specs=pl.BlockSpec((tile_b, IF), lambda i: (i, 0)),
        ),
        compiler_params=pltpu.CompilerParams(
            dimension_semantics=("parallel",),   # batch tiles are independent
            vmem_limit_bytes=32 << 20,           # safe on v7x's 64 MiB VMEM too
        ),
    )(M_bd, b_flat, x_flat)

    return out_flat.reshape(*lead, n_inst, n_feats)


if __name__ == "__main__":
    # Config matching the module: n_inst=8, n_features=5, d_hidden=2.
    n_inst, n_features, d_hidden = 8, 5, 2
    batch = 2

    key = jax.random.PRNGKey(0)
    k_w, k_x = jax.random.split(key)

    # Deterministic xavier_normal_-style init for W.
    fan_in = d_hidden * n_features
    fan_out = n_inst * n_features
    xavier_std = (2.0 / (fan_in + fan_out)) ** 0.5
    W = xavier_std * jax.random.normal(k_w, (n_inst, d_hidden, n_features), jnp.float32)
    b_final = jnp.zeros((n_inst, n_features), jnp.float32)

    # Input features in the native PyTorch layout (batch, inst, feats).
    features = jax.random.uniform(k_x, (batch, n_inst, n_features), jnp.float32)

    out = toy_model_forward(features, W, b_final)
    out = jax.block_until_ready(out)

    # Pure-JAX reference (two-step einsum, matching the PyTorch module).
    h_ref = jnp.einsum("bif,ihf->bih", features, W)
    out_ref = jnp.einsum("bih,ihf->bif", h_ref, W)
    out_ref = jnp.maximum(out_ref + b_final[None], 0.0)

    assert out.shape == (batch, n_inst, n_features)
    assert jnp.allclose(out, out_ref, atol=1e-5, rtol=1e-5)

    print("KERNEL_OK")
</pallas_src>

<mosaic_0001>
module attributes {stable_mosaic.version = 11 : i64} {
  func.func @toy_model_kernel(%arg0: i32, %arg1: memref<40x40xf32, #tpu.memory_space<vmem>>, %arg2: memref<1x40xf32, #tpu.memory_space<vmem>>, %arg3: memref<2x40xf32, #tpu.memory_space<vmem>>, %arg4: memref<2x40xf32, #tpu.memory_space<vmem>>) attributes {dimension_semantics = [#tpu.dimension_semantics<parallel>], iteration_bounds = array<i64: 1>, scalar_prefetch = 0 : i64, scratch_operands = 0 : i64, tpu.core_type = #tpu.core_type<tc>, window_params = [{pipeline_mode = #tpu.pipeline_mode<synchronous>, transform_indices = @transform_0, window_bounds = array<i64: 40, 40>}, {pipeline_mode = #tpu.pipeline_mode<synchronous>, transform_indices = @transform_1, window_bounds = array<i64: 1, 40>}, {transform_indices = @transform_2, window_bounds = array<i64: 2, 40>}, {transform_indices = @transform_3, window_bounds = array<i64: 2, 40>}]} {
    %c0 = arith.constant 0 : index
    %c0_0 = arith.constant 0 : index
    %0 = vector.load %arg3[%c0, %c0_0] : memref<2x40xf32, #tpu.memory_space<vmem>>, vector<2x40xf32>
    %c0_1 = arith.constant 0 : index
    %c0_2 = arith.constant 0 : index
    %1 = vector.load %arg1[%c0_1, %c0_2] : memref<40x40xf32, #tpu.memory_space<vmem>>, vector<40x40xf32>
    %cst = arith.constant dense<0.000000e+00> : vector<2x40xf32>
    %2 = tpu.matmul %0, %1, %cst {dimension_numbers = #tpu.dot_dimension_numbers<[1], [0], [0], [1], [0, 0, 1, 1], [], []>} : vector<2x40xf32>, vector<40x40xf32>, vector<2x40xf32> -> vector<2x40xf32>
    %c0_3 = arith.constant 0 : index
    %c0_4 = arith.constant 0 : index
    %3 = vector.load %arg2[%c0_3, %c0_4] : memref<1x40xf32, #tpu.memory_space<vmem>>, vector<1x40xf32>
    %4 = vector.broadcast %3 : vector<1x40xf32> to vector<2x40xf32>
    %5 = arith.addf %2, %4 : vector<2x40xf32>
    %cst_5 = arith.constant 0.000000e+00 : f32
    %6 = vector.broadcast %cst_5 : f32 to vector<2x40xf32>
    %7 = arith.maximumf %5, %6 : vector<2x40xf32>
    %c0_6 = arith.constant 0 : index
    %c0_7 = arith.constant 0 : index
    %8 = vector.load %arg4[%c0_6, %c0_7] : memref<2x40xf32, #tpu.memory_space<vmem>>, vector<2x40xf32>
    tpu.vector_store %arg4[%c0_6, %c0_7], %7 {strides = array<i32>} : memref<2x40xf32, #tpu.memory_space<vmem>>, vector<2x40xf32>,
    return
  }
  func.func @transform_0(%arg0: i32) -> (i32, i32) {
    %c0_i32 = arith.constant 0 : i32
    %c0_i32_0 = arith.constant 0 : i32
    %c0_i32_1 = arith.constant 0 : i32
    return %c0_i32, %c0_i32_0 : i32, i32
  }
  func.func @transform_1(%arg0: i32) -> (i32, i32) {
    %c0_i32 = arith.constant 0 : i32
    %c0_i32_0 = arith.constant 0 : i32
    %c0_i32_1 = arith.constant 0 : i32
    return %c0_i32, %c0_i32_0 : i32, i32
  }
  func.func @transform_2(%arg0: i32) -> (i32, i32) {
    %c0_i32 = arith.constant 0 : i32
    %c0_i32_0 = arith.constant 0 : i32
    return %arg0, %c0_i32 : i32, i32
  }
  func.func @transform_3(%arg0: i32) -> (i32, i32) {
    %c0_i32 = arith.constant 0 : i32
    %c0_i32_0 = arith.constant 0 : i32
    return %arg0, %c0_i32 : i32, i32
  }
}

</mosaic_0001>

<bundles_post_ra>
// kernel: tpu_custom_call.1
= control target key start
LH: loop header
LB: loop body
LE: loop exit
PB: predicated region body
PF: predicated region fallthrough
CT: control target
= control target key end

     0   :  { %8 = vsyncpa [#allocation3], 0  ;;  %s273_s0 = inlined_call_operand.hbm [shape: f32[40,40], index: 0, kind: input, shape index: {}]   ;;  %s274_s1 = inlined_call_operand.vmem [shape: f32[1,40], index: 1, kind: input, shape index: {}]   ;;  %s275_s2 = inlined_call_operand.vmem [shape: f32[2,40], index: 2, kind: input, shape index: {}]   ;;  %s276_s3 = inlined_call_operand.hbm [shape: f32[2,40], index: 3, kind: output, shape index: {}]  }
   0x1   :  { %9 = vsyncpa [#allocation4], 0  ;;  %s216_s12 = smov [#allocation2]   ;;  %s168_s16 = scalar_lea.hbm %s273_s0, 640 }
   0x2   :  { %s15_s13 = sshll.u32 %s216_s12, 4  ;;  %p169_p0 = scmp.ne.s32.totalorder %s273_s0, %s168_s16  ;;  %s16_s13 = int_to_ptr.vmem [resolvable:$true] %s15_s13 }
   0x3   :  { %p172_p1 = scmp.lt.u32.totalorder %s168_s16, %s273_s0 }
   0x5   :  { %p174_p2 = pnand %p172_p1, %p169_p0 }
   0x7   :  { %177 = shalt.err (!%p174_p2)
}
   0x8   :  { %s178_s21 = scalar_lea.vmem %s16_s13, 640  ;;  %p183_p4 = scmp.lt.s32.totalorder %s16_s13, %s16_s13 }
   0x9   :  { %p179_p3 = scmp.ne.s32.totalorder %s16_s13, %s178_s21  ;;  %p184_p5 = scmp.lt.s32.totalorder %s178_s21, %s178_s21 }
   0xb   :  { %p185_p6 = por %p184_p5, %p183_p4 }
   0xd   :  { %p186_p7 = pnand %p185_p6, %p179_p3 }
   0xf   :  { %189 = shalt.err (!%p186_p7)
}
  0x10   :  { %s217_s22 = smov 128   ;;  %s218_s23 = smov 8  }
  0x11   :  { %21 = dma.hbm_to_vmem [thread:$0]  %s273_s0, 640, %s16_s13, [#allocation3], %s217_s22, %s217_s22, %s218_s23  }
  0x12   :  { %212 = dma.done.wait [#allocation3], 640  }
  0x13   :  { %213 = vsyncadd [#allocation3], 4294966656  ;;  %v219_v0 = vmov 0.0|0.0   ;;  %vm220_vm0 = vmmov 0   ;;  %v221_v1 = vmov 0.0   ;;  %v30_v2 = vld [vmem:[#allocation2] sm:$0xff] }
  0x14   :  { %155 = vmatprep.subr.bf16.mxu0 %v219_v0  ;;  %152 = vmatprep.mubr.msk.f32.mxu0 %vm220_vm0, %v221_v1  ;;  %v31_v3 = vld [vmem:[#allocation2 + $0x8] sm:$0xff]  ;;  %v32_v4 = vld [vmem:[#allocation2 + $0x10] sm:$0xff]  ;;  %v33_v6 = vld [vmem:[#allocation2 + $0x18] sm:$0xff]  ;;  %vm42_vm1 = vcmask 326656   ;;  %s222_s29 = smov [#allocation5]   ;;  %vm117_vm2 = vcmask 320512  }
  0x15   :  { %v156_v5 = vpack.c.bf16 %v31_v3, %v30_v2  ;;  %v159_v7 = vpack.c.bf16 %v33_v6, %v32_v4  ;;  %v34_v8 = vld [vmem:[#allocation2 + $0x20] sm:$0xff]  ;;  %s125_s30 = sshll.u32 %s222_s29, 4  ;;  %s126_s30 = int_to_ptr.vmem [resolvable:$true] %s125_s30 }
  0x16   :  { %v29_v9 = vld [vmem:[%s275_s2] sm:$0x3]  ;;  %s190_s4 = scalar_lea.vmem %s126_s30, 32  ;;  %p195_p9 = scmp.lt.s32.totalorder %s126_s30, %s126_s30 }
  0x17   :  { %157 = vmatpush3.bf16.msra.mxu0 %v156_v5  ;;  %v134_v10 = vld [vmem:[%s274_s1] ss:$0 sm:$0xff]  ;;  %p191_p8 = scmp.ne.s32.totalorder %s126_s30, %s190_s4  ;;  %p196_p10 = scmp.lt.s32.totalorder %s190_s4, %s190_s4 }
  0x18   :  { %158 = vmatprep.subr.bf16.mxu0 %v219_v0 }
  0x19   :  { %p197_p11 = por %p196_p10, %p195_p9 }
  0x1b   :  { %160 = vmatpush3.bf16.msra.mxu0 %v159_v7  ;;  %p198_p12 = pnand %p197_p11, %p191_p8 }
  0x1c   :  { %150 = vmatprep.subr.mxu0 %v221_v1 }
  0x1f   :  { %151 = vmatpush3.msra.mxu0 %v34_v8 }
  0x20   :  { %153 = vmatmul.mubr.msk.f32.vlgmr.msra.gmra.mrb[0].mxu0 %vm42_vm1, %v29_v9 }
  0xf3   :  { %v112_v11 = vpop.f32.mrb[0].mxu0 }
  0xf4   :  { %v113_v12 = vadd.f32 %v134_v10, %v112_v11  ;;  %v154_v13 = vpop.f32.mrb[1].mxu0 }
  0xf6   :  { %v116_v14 = vmax.f32 %v113_v12, 0.0 }
  0xf8   :  { %118 = vst.msk [vmem:[#allocation5] sm:$0x3] %vm117_vm2, %v116_v14 }
  0xf9   :  { %201 = shalt.err (!%p198_p12)
}
  0xfa   :  { %s202_s1 = scalar_lea.hbm %s276_s3, 32 }
  0xfb   :  { %p203_p13 = scmp.ne.s32.totalorder %s276_s3, %s202_s1  ;;  %p206_p0 = scmp.lt.u32.totalorder %s202_s1, %s276_s3 }
  0xfd   :  { %p208_p1 = pnand %p206_p0, %p203_p13 }
  0xff   :  { %211 = shalt.err (!%p208_p1)
}
 0x100   :  { %128 = dma.vmem_to_hbm [thread:$0]  %s126_s30, 32, %s276_s3, [#allocation4]  }
 0x101   :  { %214 = dma.done.wait [#allocation4], 32  }
 0x102   :  { %215 = vsyncadd [#allocation4], 4294967264 }
 0x103   :  { %132 = vsyncpa [#allocation3], 1 }
 0x104   :  { %133 = vsyncpa [#allocation4], 1 }

</bundles_post_ra>
